<compile_context>
chip_gen: v6e
topology: v6e:2x2x1
jax: 0.10.0
libtpu: 0.0.40
codegen_flags: <defaults>
</compile_context>

<pallas_src>
import jax
import jax.numpy as jnp
from jax.experimental import pallas as pl
from jax.experimental.pallas import tpu as pltpu


def _nconv_kernel(x_ref, a_ref, o_ref):
    # x_ref: (TB, V, L)   a_ref: (V, W)   o_ref: (TB, L, W)
    a = a_ref[...]                      # loaded once per grid step, A stays resident
    tb = x_ref.shape[0]

    def body(b, carry):
        xb = x_ref[b]                   # (V, L) slab
        # out_b[l, w] = sum_v xb[v, l] * a[v, w]
        # transposed-LHS matmul: no transpose materialized, MXU N-dim = W
        ob = jax.lax.dot_general(
            xb, a,
            dimension_numbers=(((0,), (0,)), ((), ())),
            preferred_element_type=jnp.float32,
        )                               # (L, W) — lane-dense result tile
        o_ref[b] = ob.astype(o_ref.dtype)
        return carry

    jax.lax.fori_loop(0, tb, body, 0)


def _round_up(a, m):
    return ((a + m - 1) // m) * m


def _pick_batch_tile(B, V, L, W, itemsize, budget_bytes):
    """Largest batch tile whose (padded) double-buffered VMEM footprint fits."""
    # Padded VMEM footprint per batch element (sublane -> mult of 8, lane -> mult of 128)
    x_row = _round_up(V, 8) * _round_up(L, 128) * itemsize
    o_row = _round_up(L, 8) * _round_up(W, 128) * itemsize
    a_bytes = _round_up(V, 8) * _round_up(W, 128) * itemsize
    per_b = 2 * (x_row + o_row)         # double-buffered input + output blocks
    cap = max(1, (budget_bytes - a_bytes) // per_b)
    if B <= cap:
        return B                        # whole problem resident -> grid=(1,)
    best, best_even = 1, None
    for d in range(1, B + 1):
        if B % d or d > cap:
            continue
        best = max(best, d)
        if (B // d) % 2 == 0:           # prefer an even grid extent (v7x megacore)
            best_even = d if best_even is None else max(best_even, d)
    return best_even if best_even is not None else best


def nconv(x, A, *, vmem_block_budget_bytes=20 * 1024 * 1024):
    """Pallas equivalent of torch.einsum('ncvl,vw->ncwl', x, A).

    x: (N, C, V, L), A: (V, W)  ->  (N, C, W, L)
    """
    N, C, V, L = x.shape
    V2, W = A.shape
    assert V == V2, "node dimension of x must match first dim of A"

    B = N * C
    xb = x.reshape(B, V, L)             # free reshape (no data movement)

    itemsize = jnp.dtype(x.dtype).itemsize
    TB = _pick_batch_tile(B, V, L, W, itemsize, vmem_block_budget_bytes)
    grid_b = B // TB

    out_blw = pl.pallas_call(
        _nconv_kernel,
        out_shape=jax.ShapeDtypeStruct((B, L, W), x.dtype),
        grid_spec=pltpu.PrefetchScalarGridSpec(
            num_scalar_prefetch=0,
            grid=(grid_b,),
            in_specs=[
                # TB slabs of x per step; (V, L) are the full array extents
                pl.BlockSpec((TB, V, L), lambda i: (i, 0, 0)),
                # A: constant block index -> stays resident in VMEM, no re-DMA
                pl.BlockSpec((V, W), lambda i: (0, 0)),
            ],
            # lane-dense output blocks: last dim is W
            out_specs=pl.BlockSpec((TB, L, W), lambda i: (i, 0, 0)),
        ),
        compiler_params=pltpu.CompilerParams(
            dimension_semantics=("parallel",),
            vmem_limit_bytes=32 * 1024 * 1024,   # explicit; fits v5e/v6e/v7x scoped VMEM
        ),
    )(xb, A)

    # Layout plumbing (outside the kernel): (B, L, W) -> (N, C, W, L)
    return jnp.swapaxes(out_blw.reshape(N, C, L, W), -1, -2)


if __name__ == "__main__":
    key = jax.random.PRNGKey(0)
    kx, ka = jax.random.split(key)

    # Small shapes consistent with the module: N=2, C=4, V=16 nodes, L=8 steps.
    N, C, V, L = 2, 4, 16, 8
    W = V  # square adjacency, as typical for graph conv

    x = jax.random.normal(kx, (N, C, V, L), dtype=jnp.float32)
    A = jax.random.normal(ka, (V, W), dtype=jnp.float32)

    out = nconv(x, A)
    jax.block_until_ready(out)

    # Reference check against plain-JAX einsum (same semantics as torch.einsum).
    ref = jnp.einsum("ncvl,vw->ncwl", x, A)
    assert out.shape == (N, C, W, L)
    assert jnp.allclose(out, ref, atol=1e-4, rtol=1e-4)

    print("KERNEL_OK")
</pallas_src>

<mosaic_0001>
module attributes {stable_mosaic.version = 11 : i64} {
  func.func @_nconv_kernel(%arg0: i32, %arg1: memref<8x16x8xf32, #tpu.memory_space<vmem>>, %arg2: memref<16x16xf32, #tpu.memory_space<vmem>>, %arg3: memref<8x8x16xf32, #tpu.memory_space<vmem>>) attributes {dimension_semantics = [#tpu.dimension_semantics<parallel>], iteration_bounds = array<i64: 1>, scalar_prefetch = 0 : i64, scratch_operands = 0 : i64, tpu.core_type = #tpu.core_type<tc>, window_params = [{transform_indices = @transform_0, window_bounds = array<i64: 8, 16, 8>}, {pipeline_mode = #tpu.pipeline_mode<synchronous>, transform_indices = @transform_1, window_bounds = array<i64: 16, 16>}, {transform_indices = @transform_2, window_bounds = array<i64: 8, 8, 16>}]} {
    %c0 = arith.constant 0 : index
    %c0_0 = arith.constant 0 : index
    %0 = vector.load %arg2[%c0, %c0_0] : memref<16x16xf32, #tpu.memory_space<vmem>>, vector<16x16xf32>
    %c0_i32 = arith.constant 0 : i32
    %c8_i32 = arith.constant 8 : i32
    %1 = arith.addi %c0_i32, %c8_i32 : i32
    %c1_i32 = arith.constant 1 : i32
    scf.for %arg4 = %c0_i32 to %1 step %c1_i32  : i32 {
      %2 = arith.index_cast %arg4 : i32 to index
      %c0_2 = arith.constant 0 : index
      %c0_3 = arith.constant 0 : index
      %3 = vector.load %arg1[%2, %c0_2, %c0_3] : memref<8x16x8xf32, #tpu.memory_space<vmem>>, vector<1x16x8xf32>
      %4 = vector.shape_cast %3 : vector<1x16x8xf32> to vector<16x8xf32>
      %cst = arith.constant dense<0.000000e+00> : vector<8x16xf32>
      %5 = tpu.matmul %4, %0, %cst {dimension_numbers = #tpu.dot_dimension_numbers<[0], [0], [1], [1], [0, 1, 1, 1], [], []>} : vector<16x8xf32>, vector<16x16xf32>, vector<8x16xf32> -> vector<8x16xf32>
      %6 = arith.index_cast %arg4 : i32 to index
      %c0_4 = arith.constant 0 : index
      %c0_5 = arith.constant 0 : index
      %7 = vector.load %arg3[%6, %c0_4, %c0_5] : memref<8x8x16xf32, #tpu.memory_space<vmem>>, vector<1x8x16xf32>
      %8 = vector.shape_cast %7 : vector<1x8x16xf32> to vector<8x16xf32>
      %9 = vector.shape_cast %5 : vector<8x16xf32> to vector<1x8x16xf32>
      tpu.vector_store %arg3[%6, %c0_4, %c0_5], %9 {strides = array<i32>} : memref<8x8x16xf32, #tpu.memory_space<vmem>>, vector<1x8x16xf32>,
    }
    %c8_i32_1 = arith.constant 8 : i32
    return
  }
  func.func @transform_0(%arg0: i32) -> (i32, i32, i32) {
    %c0_i32 = arith.constant 0 : i32
    %c0_i32_0 = arith.constant 0 : i32
    %c0_i32_1 = arith.constant 0 : i32
    return %arg0, %c0_i32, %c0_i32_0 : i32, i32, i32
  }
  func.func @transform_1(%arg0: i32) -> (i32, i32) {
    %c0_i32 = arith.constant 0 : i32
    %c0_i32_0 = arith.constant 0 : i32
    %c0_i32_1 = arith.constant 0 : i32
    return %c0_i32, %c0_i32_0 : i32, i32
  }
  func.func @transform_2(%arg0: i32) -> (i32, i32, i32) {
    %c0_i32 = arith.constant 0 : i32
    %c0_i32_0 = arith.constant 0 : i32
    %c0_i32_1 = arith.constant 0 : i32
    return %arg0, %c0_i32, %c0_i32_0 : i32, i32, i32
  }
}

</mosaic_0001>

<bundles_post_ra>
// kernel: tpu_custom_call.1
= control target key start
LH: loop header
LB: loop body
LE: loop exit
PB: predicated region body
PF: predicated region fallthrough
CT: control target
= control target key end

     0   :  { %7 = vsyncpa [#allocation3], 0  ;;  %s210_s13 = smov 0   ;;  %s246_s0 = inlined_call_operand.vmem [shape: f32[8,16,8], index: 0, kind: input, shape index: {}]   ;;  %s247_s1 = inlined_call_operand.vmem [shape: f32[16,16], index: 1, kind: input, shape index: {}]   ;;  %s248_s2 = inlined_call_operand.hbm [shape: f32[8,8,16], index: 2, kind: output, shape index: {}]  }
   0x1   :  { %v12_v0 = vld [vmem:[%s247_s1] sm:$0xff]  ;;  %v13_v1 = vld [vmem:[%s247_s1 + $0x8] sm:$0xff] }
   0x2 LB: > { %v214_v2 = vmov 0.0   ;;  %vm215_vm0 = vmmov 0   ;;  %s158_s14 = sshll.u32 %s212_s13, 4  ;;  %vm56_vm1 = vcmask 130048   ;;  %s160_s1 = sshll.u32 %s212_s13, 3  ;;  %s212_s13 = sphi %s210_s13, %s19_s13  }
   0x3   : > { %164 = vmatprep.subr.mxu0 %v214_v2  ;;  %168 = vmatprep.mubr.msk.f32.mxu0 %vm215_vm0, %v214_v2  ;;  %s21_s17 = scalar_lea.vmem %s246_s0, %s158_s14  ;;  %s131_s18 = scalar_lea.vmem [#allocation2], %s160_s1 }
   0x4   : > { %165 = vmatpush3.msra.mxu0 %v13_v1  ;;  %v22_v3 = vld [vmem:[%s21_s17] sm:$0xff]  ;;  %v23_v4 = vld [vmem:[%s21_s17 + $0x8] sm:$0xff]  ;;  %s19_s13 = sadd.s32 1, %s212_s13  }
   0x5   : > { %166 = vmatprep.subr.mxu0 %v214_v2  ;;  %24 = vxpose.xlu0.b32.start [1/2] (short) (narrow) %v22_v3, 8  ;;  %p16_p0 = scmp.ge.s32.totalorder %s19_s13, 8  }
   0x6   : > { %167 = vmatpush3.msra.mxu0 %v12_v0  ;;  %s216_s19 = smov (%p16_p0), [#allocation2]  }
   0x7   :  { %s138_s20 = sshll.u32 (%p16_p0), %s216_s19, 4  ;;  %s139_s20 = int_to_ptr.vmem [resolvable:$true] %s138_s20 }
   0x8   :  { %s184_s21 = scalar_lea.vmem (%p16_p0), %s139_s20, 1024  ;;  %p189_p2 = scmp.lt.s32.totalorder (%p16_p0), %s139_s20, %s139_s20 }
   0x9   : > { %25 = vxpose.xlu0.b32.end [2/2] (short) (narrow) %v23_v4, 8  ;;  %p185_p1 = scmp.ne.s32.totalorder (%p16_p0), %s139_s20, %s184_s21  ;;  %p190_p3 = scmp.lt.s32.totalorder (%p16_p0), %s184_s21, %s184_s21 }
   0xb   :  { %p191_p4 = por (%p16_p0), %p190_p3, %p189_p2 }
   0xd   :  { %p192_p5 = pnand (%p16_p0), %p191_p4, %p185_p1 }
  0x81   : > { %v40_v5 = vpop.trf.xlu0 }
  0x82   : > { %169 = vmatmul.mubr.msk.f32.vlgmr.msra.gmra.mxu0 %vm56_vm1, %v40_v5 }
 0x140   :  { %18 = sbr.rel (!%p16_p0) target bundleno = 2 (0x2), region = 37 }
 0x142   : > { %v126_v6 = vpop.f32.mrf.mxu0 }
 0x143   : > { %132 = vst.msk [vmem:[%s131_s18] sm:$0xff] %vm56_vm1, %v126_v6 }
 0x144   : > { %v170_v7 = vpop.f32.mrf.mxu0 }
 0x145   :  { %195 = shalt.err (!%p192_p5)
}
 0x146   :  { %s217_s22 = smov 128   ;;  %s218_s23 = smov 8  }
 0x147   :  { %144 = dma.vmem_to_hbm [thread:$0]  %s139_s20, 1024, %s248_s2, [#allocation3], %s217_s22, %s217_s22, %s218_s23  }
 0x148   :  { %208 = dma.done.wait [#allocation3], 1024  }
 0x149   :  { %209 = vsyncadd [#allocation3], 4294966272 }
 0x14a   :  { %148 = vsyncpa [#allocation3], 1 }

</bundles_post_ra>
